<compile_context>
chip_gen: v7x
topology: tpu7x:2x2x1
jax: 0.10.0
libtpu: 0.0.40
codegen_flags: <defaults>
</compile_context>

<pallas_src>
import functools

import jax
import jax.numpy as jnp
from jax import lax
from jax.experimental import pallas as pl
from jax.experimental.pallas import tpu as pltpu

_SUBLANES = 8
_LANES = 128


# ----------------------------------------------------------------------------
# Kernel
# ----------------------------------------------------------------------------
def _ce_kernel(logits_ref, tgt_ref, out_ref, *, ignore_idx, n_rows, class_chunk):
    """Per-row-tile partial CE.

    Writes one (1, 8, 128) f32 block: sublane 0 = sum of losses over valid
    rows in this tile, sublane 1 = number of valid rows (exact integer).
    """
    i = pl.program_id(0)
    tile_rows, n_classes = logits_ref.shape
    t = tgt_ref[...]                                    # (TR, 1) int32

    if class_chunk is None or class_chunk >= n_classes:
        # ---- Single pass over the full class (lane) axis. ------------------
        # Casts are fused into the chains feeding each reduction; no bound
        # full-tile f32 temp is created.
        x = logits_ref[...]                                             # native
        m = jnp.max(x, axis=-1, keepdims=True).astype(jnp.float32)     # (TR,1)
        l = jnp.sum(jnp.exp(x.astype(jnp.float32) - m),
                    axis=-1, keepdims=True)                            # (TR,1)
        cls = lax.broadcasted_iota(jnp.int32, x.shape, 1)               # (TR,E)
        # Exactly one nonzero addend per row -> summing in the native dtype is
        # exact; cast the (TR,1) result only.
        tgt_logit = jnp.sum(
            jnp.where(cls == t, x, jnp.zeros((), x.dtype)),
            axis=-1, keepdims=True).astype(jnp.float32)                 # (TR,1)
        lse = jnp.log(l) + m
    else:
        # ---- Chunked online logsumexp over the class axis. -----------------
        # Keeps compute temporaries vreg/chunk-sized regardless of vocab size.
        n_chunks = n_classes // class_chunk

        def body(c, carry):
            m_run, l_run, g_run = carry
            off = pl.multiple_of(c * class_chunk, class_chunk)
            xb = logits_ref[:, pl.ds(off, class_chunk)].astype(jnp.float32)
            mb = jnp.max(xb, axis=-1, keepdims=True)
            m_new = jnp.maximum(m_run, mb)
            scale = jnp.exp(m_run - m_new)
            l_new = l_run * scale + jnp.sum(jnp.exp(xb - m_new),
                                            axis=-1, keepdims=True)
            cls = off + lax.broadcasted_iota(jnp.int32, xb.shape, 1)
            g_new = g_run + jnp.sum(jnp.where(cls == t, xb, 0.0),
                                    axis=-1, keepdims=True)
            return m_new, l_new, g_new

        init = (jnp.full((tile_rows, 1), -jnp.inf, jnp.float32),
                jnp.zeros((tile_rows, 1), jnp.float32),
                jnp.zeros((tile_rows, 1), jnp.float32))
        m_run, l_run, tgt_logit = lax.fori_loop(
            0, n_chunks, body, init, unroll=(n_chunks <= 8))
        lse = jnp.log(l_run) + m_run

    # Validity: not ignore_index AND inside the real row range (the tail tile
    # may read past the end of the array -> select-mask those rows so garbage
    # / NaN cannot propagate).
    row = i * tile_rows + lax.broadcasted_iota(jnp.int32, t.shape, 0)   # (TR,1)
    valid = jnp.logical_and(t != ignore_idx, row < n_rows)              # (TR,1)

    per_row = jnp.where(valid, lse - tgt_logit, 0.0)                    # (TR,1)
    cnt_row = jnp.where(valid, 1.0, 0.0)                                # (TR,1)

    # One packed, lane-dense (1, 8, 128) partial output -> a single unmasked
    # full-vreg store per grid step (half the output DMA descriptors of two
    # separate outputs).
    sub = lax.broadcasted_iota(jnp.int32, (_SUBLANES, _LANES), 0)
    blk = jnp.where(sub == 0, jnp.sum(per_row),
                    jnp.where(sub == 1, jnp.sum(cnt_row), 0.0))
    out_ref[...] = blk[None]


# ----------------------------------------------------------------------------
# Sizing helpers
# ----------------------------------------------------------------------------
def _hw_vmem_bytes():
    """Physical VMEM per TensorCore, with a conservative (v7x-sized) fallback."""
    try:
        info = pltpu.get_tpu_info()
        cap = int(getattr(info, "vmem_capacity_bytes", 0))
        if cap > 0:
            return cap
    except Exception:
        pass
    return 64 * 1024 * 1024


def _pick_class_chunk(n_classes):
    """Lane-chunk size for the in-kernel online-logsumexp loop (None = single
    pass).  Only chunk when the vocab is large and cleanly divisible."""
    if n_classes <= 4096:
        return None
    for c in (4096, 2048, 1024, 512, 256, 128):
        if n_classes % c == 0:
            return c
    return None


def _pick_tile_rows(n_rows, per_row_bytes, gran, block_bytes):
    """Largest row tile whose (double-buffered) block stays ~<= block_bytes,
    respecting the dtype's sublane packing granularity."""
    tr = block_bytes // max(per_row_bytes, 1)
    tr = max(gran, min(int(tr), 4096))
    tr = (tr // gran) * gran
    # Never let the block exceed the (sublane-rounded-down) array extent.
    tr = min(tr, max(gran, (n_rows // gran) * gran))
    return tr


# ----------------------------------------------------------------------------
# Wrapper
# ----------------------------------------------------------------------------
def cross_entropy_loss(logits, ground_truth, ignore_idx, *,
                       tile_rows=None, class_chunk=None):
    """Equivalent of Loss(ignore_idx)(logits, ground_truth).

    logits:       (B, L, E) float
    ground_truth: (B, L)    int   (class indices; ignore_idx entries skipped)
    returns:      scalar float32 mean CE over non-ignored tokens
                  (NaN if every token is ignored, matching PyTorch).
    """
    B, L, E = logits.shape
    N = B * L
    x = logits.reshape(N, E)
    t = ground_truth.reshape(N, 1).astype(jnp.int32)

    itemsize = jnp.dtype(logits.dtype).itemsize
    gran = {4: 8, 2: 16, 1: 32}.get(itemsize, 8)

    if class_chunk is None:
        class_chunk = _pick_class_chunk(E)
    elif class_chunk >= E or E % class_chunk != 0 or class_chunk % _LANES != 0:
        class_chunk = None            # fall back to the single-pass path

    # Generation-aware budgets (v5e/v6e: 128 MiB VMEM -> 96 MiB limit;
    # v7x: 64 MiB VMEM -> 48 MiB limit; 8 MiB logits blocks on all).
    vmem_cap = _hw_vmem_bytes()
    vmem_limit = min((vmem_cap * 3) // 4, 96 * 1024 * 1024)
    block_bytes = min(8 * 1024 * 1024, vmem_limit // 4)

    # Per-row VMEM cost of one (double-buffered) block: logits row + the
    # lane-padded (TR,1)->(TR,128) int32 target row; for sub-32-bit inputs on
    # the single-pass path also budget one fused f32 temp row (worst case).
    per_row_bytes = E * itemsize + _LANES * 4
    if class_chunk is None and itemsize < 4:
        per_row_bytes += E * 4

    if tile_rows is None:
        tile_rows = _pick_tile_rows(N, per_row_bytes, gran, block_bytes)
    else:
        tile_rows = max(gran, (int(tile_rows) // gran) * gran)

    # Only a tiny input (smaller than one tile) is ever padded; the big-N path
    # never copies the logits tensor.
    n_phys = N
    if N < tile_rows:
        pad = tile_rows - N
        x = jnp.pad(x, ((0, pad), (0, 0)))
        t = jnp.pad(t, ((0, pad), (0, 0)), constant_values=ignore_idx)
        n_phys = tile_rows

    n_tiles = pl.cdiv(n_phys, tile_rows)

    kernel = functools.partial(
        _ce_kernel, ignore_idx=int(ignore_idx), n_rows=N,
        class_chunk=class_chunk)

    cost = pl.CostEstimate(
        flops=int(6 * N * E),
        transcendentals=int(N * E + 2 * N),
        bytes_accessed=int(N * E * itemsize + N * 4
                           + n_tiles * _SUBLANES * _LANES * 4),
    )

    out = pl.pallas_call(
        kernel,
        out_shape=jax.ShapeDtypeStruct((n_tiles, _SUBLANES, _LANES), jnp.float32),
        grid_spec=pltpu.PrefetchScalarGridSpec(
            num_scalar_prefetch=0,
            grid=(n_tiles,),
            in_specs=[
                pl.BlockSpec((tile_rows, E), lambda i: (i, 0)),
                pl.BlockSpec((tile_rows, 1), lambda i: (i, 0)),
            ],
            out_specs=pl.BlockSpec((1, _SUBLANES, _LANES), lambda i: (i, 0, 0)),
        ),
        compiler_params=pltpu.CompilerParams(
            dimension_semantics=("parallel",),   # independent row tiles (v7x TCs)
            vmem_limit_bytes=int(vmem_limit),
        ),
        cost_estimate=cost,
    )(x, t)

    total = jnp.sum(out[:, 0, 0])
    # Per-tile counts are exact integers in f32; sum them in int32 so the
    # total count stays exact past 2^24 tokens.
    count = jnp.sum(out[:, 1, 0].astype(jnp.int32))
    return total / count.astype(jnp.float32)


# ----------------------------------------------------------------------------
# Pure-JAX reference + tests
# ----------------------------------------------------------------------------
def _reference_loss(logits, ground_truth, ignore_idx):
    """Pure-JAX reference matching nn.CrossEntropyLoss(ignore_index=...)."""
    B, L, E = logits.shape
    x = logits.reshape(-1, E).astype(jnp.float32)
    t = ground_truth.reshape(-1)
    lse = jax.scipy.special.logsumexp(x, axis=-1)
    tgt_logit = jnp.take_along_axis(x, jnp.clip(t, 0, E - 1)[:, None], axis=-1)[:, 0]
    valid = (t != ignore_idx).astype(jnp.float32)
    return jnp.sum((lse - tgt_logit) * valid) / jnp.sum(valid)


if __name__ == "__main__":
    key = jax.random.PRNGKey(0)

    # Case 1: shapes implied by the module (B, L, E) with ignore_idx = pad = 0.
    k1, k2, k3 = jax.random.split(key, 3)
    B, L, E = 2, 8, 32
    ignore_idx = 0
    logits = jax.random.normal(k1, (B, L, E), dtype=jnp.float32)
    ground_truth = jax.random.randint(k2, (B, L), 0, E, dtype=jnp.int32)
    pad_mask = jax.random.bernoulli(k3, 0.25, (B, L))
    ground_truth = jnp.where(pad_mask, ignore_idx, ground_truth)

    loss = cross_entropy_loss(logits, ground_truth, ignore_idx)
    jax.block_until_ready(loss)
    ref = _reference_loss(logits, ground_truth, ignore_idx)
    assert jnp.allclose(loss, ref, rtol=1e-5, atol=1e-4), (loss, ref)

    # Case 2: row count not a multiple of the tile -> exercises the in-kernel
    # tail mask (no logits padding) and a negative ignore_index.
    k4, k5, k6 = jax.random.split(jax.random.PRNGKey(1), 3)
    B2, L2, E2 = 3, 37, 48
    ignore_idx2 = -100
    logits2 = jax.random.normal(k4, (B2, L2, E2), dtype=jnp.float32)
    gt2 = jax.random.randint(k5, (B2, L2), 0, E2, dtype=jnp.int32)
    gt2 = jnp.where(jax.random.bernoulli(k6, 0.3, (B2, L2)), ignore_idx2, gt2)

    loss2 = cross_entropy_loss(logits2, gt2, ignore_idx2)
    jax.block_until_ready(loss2)
    ref2 = _reference_loss(logits2, gt2, ignore_idx2)
    assert jnp.allclose(loss2, ref2, rtol=1e-5, atol=1e-4), (loss2, ref2)

    # Case 3: force the chunked online-logsumexp path (class_chunk < E) and
    # multiple row tiles (tile_rows override) to exercise the fori_loop path.
    k7, k8, k9 = jax.random.split(jax.random.PRNGKey(2), 3)
    B3, L3, E3 = 2, 24, 512
    ignore_idx3 = 0
    logits3 = jax.random.normal(k7, (B3, L3, E3), dtype=jnp.float32)
    gt3 = jax.random.randint(k8, (B3, L3), 0, E3, dtype=jnp.int32)
    gt3 = jnp.where(jax.random.bernoulli(k9, 0.2, (B3, L3)), ignore_idx3, gt3)

    loss3 = cross_entropy_loss(logits3, gt3, ignore_idx3,
                               tile_rows=16, class_chunk=128)
    jax.block_until_ready(loss3)
    ref3 = _reference_loss(logits3, gt3, ignore_idx3)
    assert jnp.allclose(loss3, ref3, rtol=1e-5, atol=1e-4), (loss3, ref3)

    print("KERNEL_OK")
</pallas_src>

<mosaic_0001>
module attributes {stable_mosaic.version = 11 : i64} {
  func.func @_ce_kernel(%arg0: i32, %arg1: memref<16x32xf32, #tpu.memory_space<vmem>>, %arg2: memref<16x1xi32, #tpu.memory_space<vmem>>, %arg3: memref<1x8x128xf32, #tpu.memory_space<vmem>>) attributes {dimension_semantics = [#tpu.dimension_semantics<parallel>], iteration_bounds = array<i64: 1>, scalar_prefetch = 0 : i64, scratch_operands = 0 : i64, tpu.core_type = #tpu.core_type<tc>, window_params = [{transform_indices = @transform_0, window_bounds = array<i64: 16, 32>}, {transform_indices = @transform_1, window_bounds = array<i64: 16, 1>}, {transform_indices = @transform_2, window_bounds = array<i64: 1, 8, 128>}]} {
    %c0 = arith.constant 0 : index
    %c0_0 = arith.constant 0 : index
    %0 = vector.load %arg2[%c0, %c0_0] : memref<16x1xi32, #tpu.memory_space<vmem>>, vector<16x1xi32>
    %c0_1 = arith.constant 0 : index
    %c0_2 = arith.constant 0 : index
    %1 = vector.load %arg1[%c0_1, %c0_2] : memref<16x32xf32, #tpu.memory_space<vmem>>, vector<16x32xf32>
    %cst = arith.constant dense<0xFF800000> : vector<16xf32>
    %2 = vector.multi_reduction <maximumf>, %1, %cst [1] : vector<16x32xf32> to vector<16xf32>
    %3 = vector.shape_cast %2 : vector<16xf32> to vector<16x1xf32>
    %4 = vector.broadcast %3 : vector<16x1xf32> to vector<16x32xf32>
    %5 = arith.subf %1, %4 : vector<16x32xf32>
    %6 = math.exp %5 : vector<16x32xf32>
    %cst_3 = arith.constant dense<0.000000e+00> : vector<16xf32>
    %7 = vector.multi_reduction <add>, %6, %cst_3 [1] : vector<16x32xf32> to vector<16xf32>
    %8 = vector.shape_cast %7 : vector<16xf32> to vector<16x1xf32>
    %9 = tpu.iota {dimensions = array<i32: 1>} : vector<16x32xi32>
    %10 = vector.broadcast %0 : vector<16x1xi32> to vector<16x32xi32>
    %11 = arith.cmpi eq, %9, %10 : vector<16x32xi32>
    %cst_4 = arith.constant 0.000000e+00 : f32
    %12 = vector.broadcast %cst_4 : f32 to vector<16x32xf32>
    %13 = arith.select %11, %1, %12 : vector<16x32xi1>, vector<16x32xf32>
    %cst_5 = arith.constant dense<0.000000e+00> : vector<16xf32>
    %14 = vector.multi_reduction <add>, %13, %cst_5 [1] : vector<16x32xf32> to vector<16xf32>
    %15 = vector.shape_cast %14 : vector<16xf32> to vector<16x1xf32>
    %16 = math.log %8 : vector<16x1xf32>
    %17 = arith.addf %16, %3 : vector<16x1xf32>
    %c16_i32 = arith.constant 16 : i32
    %18 = arith.muli %arg0, %c16_i32 : i32
    %19 = tpu.iota {dimensions = array<i32: 0>} : vector<16x1xi32>
    %20 = vector.broadcast %18 : i32 to vector<16x1xi32>
    %21 = arith.addi %20, %19 : vector<16x1xi32>
    %c0_i32 = arith.constant 0 : i32
    %22 = vector.broadcast %c0_i32 : i32 to vector<16x1xi32>
    %23 = arith.cmpi ne, %0, %22 : vector<16x1xi32>
    %c16_i32_6 = arith.constant 16 : i32
    %24 = vector.broadcast %c16_i32_6 : i32 to vector<16x1xi32>
    %25 = arith.cmpi slt, %21, %24 : vector<16x1xi32>
    %26 = arith.andi %23, %25 : vector<16x1xi1>
    %27 = arith.subf %17, %15 : vector<16x1xf32>
    %cst_7 = arith.constant 0.000000e+00 : f32
    %28 = vector.broadcast %cst_7 : f32 to vector<16x1xf32>
    %29 = arith.select %26, %27, %28 : vector<16x1xi1>, vector<16x1xf32>
    %cst_8 = arith.constant 1.000000e+00 : f32
    %cst_9 = arith.constant 0.000000e+00 : f32
    %30 = vector.broadcast %cst_8 : f32 to vector<16x1xf32>
    %31 = vector.broadcast %cst_9 : f32 to vector<16x1xf32>
    %32 = arith.select %26, %30, %31 : vector<16x1xi1>, vector<16x1xf32>
    %33 = tpu.iota {dimensions = array<i32: 0>} : vector<8x128xi32>
    %c0_i32_10 = arith.constant 0 : i32
    %34 = vector.broadcast %c0_i32_10 : i32 to vector<8x128xi32>
    %35 = arith.cmpi eq, %33, %34 : vector<8x128xi32>
    %36 = vector.shape_cast %29 : vector<16x1xf32> to vector<1x16x1xf32>
    %cst_11 = arith.constant dense<0.000000e+00> : vector<1xf32>
    %37 = vector.multi_reduction <add>, %36, %cst_11 [1, 2] : vector<1x16x1xf32> to vector<1xf32>
    %38 = vector.shape_cast %37 : vector<1xf32> to vector<1x1x1xf32>
    %39 = vector.extract %38[0, 0, 0] : f32 from vector<1x1x1xf32>
    %c1_i32 = arith.constant 1 : i32
    %40 = vector.broadcast %c1_i32 : i32 to vector<8x128xi32>
    %41 = arith.cmpi eq, %33, %40 : vector<8x128xi32>
    %42 = vector.shape_cast %32 : vector<16x1xf32> to vector<1x16x1xf32>
    %cst_12 = arith.constant dense<0.000000e+00> : vector<1xf32>
    %43 = vector.multi_reduction <add>, %42, %cst_12 [1, 2] : vector<1x16x1xf32> to vector<1xf32>
    %44 = vector.shape_cast %43 : vector<1xf32> to vector<1x1x1xf32>
    %45 = vector.extract %44[0, 0, 0] : f32 from vector<1x1x1xf32>
    %cst_13 = arith.constant 0.000000e+00 : f32
    %46 = vector.broadcast %45 : f32 to vector<8x128xf32>
    %47 = vector.broadcast %cst_13 : f32 to vector<8x128xf32>
    %48 = arith.select %41, %46, %47 : vector<8x128xi1>, vector<8x128xf32>
    %49 = vector.broadcast %39 : f32 to vector<8x128xf32>
    %50 = arith.select %35, %49, %48 : vector<8x128xi1>, vector<8x128xf32>
    %51 = vector.shape_cast %50 : vector<8x128xf32> to vector<1x8x128xf32>
    %c0_14 = arith.constant 0 : index
    %c0_15 = arith.constant 0 : index
    %c0_16 = arith.constant 0 : index
    %52 = vector.load %arg3[%c0_14, %c0_15, %c0_16] : memref<1x8x128xf32, #tpu.memory_space<vmem>>, vector<1x8x128xf32>
    tpu.vector_store %arg3[%c0_14, %c0_15, %c0_16], %51 {strides = array<i32>} : memref<1x8x128xf32, #tpu.memory_space<vmem>>, vector<1x8x128xf32>,
    return
  }
  func.func @transform_0(%arg0: i32) -> (i32, i32) {
    %c0_i32 = arith.constant 0 : i32
    %c0_i32_0 = arith.constant 0 : i32
    return %arg0, %c0_i32 : i32, i32
  }
  func.func @transform_1(%arg0: i32) -> (i32, i32) {
    %c0_i32 = arith.constant 0 : i32
    %c0_i32_0 = arith.constant 0 : i32
    return %arg0, %c0_i32 : i32, i32
  }
  func.func @transform_2(%arg0: i32) -> (i32, i32, i32) {
    %c0_i32 = arith.constant 0 : i32
    %c0_i32_0 = arith.constant 0 : i32
    %c0_i32_1 = arith.constant 0 : i32
    return %arg0, %c0_i32, %c0_i32_0 : i32, i32, i32
  }
}

</mosaic_0001>

<bundles_post_ra>
// kernel: tpu_custom_call.1
= control target key start
LH: loop header
LB: loop body
LE: loop exit
PB: predicated region body
PF: predicated region fallthrough
CT: control target
= control target key end

     0   :  { %vm16_vm0 = vcmask 261120   ;;  %v165_v4 = vmov 0   ;;  %s223_s0 = inlined_call_operand.vmem [shape: f32[16,32], index: 0, kind: input, shape index: {}]   ;;  %s224_s1 = inlined_call_operand.vmem [shape: s32[16,1], index: 1, kind: input, shape index: {}]   ;;  %s225_s2 = inlined_call_operand.hbm [shape: f32[1,8,128], index: 2, kind: output, shape index: {}]  }
   0x1   :  { %v14_v0 = vld [vmem:[%s223_s0] sm:$0xff]  ;;  %v15_v1 = vld [vmem:[%s223_s0 + $0x8] sm:$0xff]  ;;  %131 = vset.pattern.permute.xlu1 %v165_v4  ;;  %132 = vset.pattern.permute.xlu0 %v165_v4 }
   0x2   :  { %v12_v2 = vld [vmem:[%s224_s1] sm:$0xff]  ;;  %v17_v3 = vsel %vm16_vm0, %v14_v0, -inf }
   0x3   :  { %7 = vsyncpa [#allocation3], 0  ;;  %18 = vmax.xlane.f32.xlu0 %v17_v3  ;;  %38 = vperm.xlu1 %131, %v12_v2   ;;  %v20_v5 = vsel %vm16_vm0, %v15_v1, -inf  ;;  %v13_v6 = vld [vmem:[%s224_s1 + $0x8] sm:$0xff]  ;;  %v35_v11 = vlaneseq  ;;  %vm66_vm3 = vcmp.ne.s32.totalorder %v12_v2, 0  ;;  %v166_v25 = vmov 0.0  }
   0x4   :  { %v76_v26 = vsel %vm66_vm3, 1.0, %v166_v25  ;;  %vm67_vm4 = vcmp.ne.s32.totalorder %v13_v6, 0  ;;  %vm79_vm5 = vcmask 7168   ;;  %s167_s1 = smov [#allocation2]  }
   0x5   :  { %v36_v15 = vand.u32 127, %v35_v11  ;;  %v77_v27 = vsel %vm67_vm4, 1.0, %v166_v25  ;;  %v93_v28 = vsel %vm79_vm5, %v76_v26, 0.0  ;;  %v61_v62 = vshrl.u32 %v35_v11, 7  ;;  %s116_s17 = sshll.u32 %s167_s1, 4  ;;  %s117_s17 = int_to_ptr.vmem [resolvable:$true] %s116_s17 }
   0x6   :  { %v94_v29 = vsel %vm79_vm5, %v77_v27, 0.0  ;;  %s141_s19 = scalar_lea.vmem %s117_s17, 128  ;;  %p146_p1 = scmp.lt.s32.totalorder %s117_s17, %s117_s17 }
   0x7   :  { %21 = vmax.xlane.f32.xlu0 %v20_v5  ;;  %41 = vperm.xlu1 %131, %v13_v6   ;;  %v95_v30 = vadd.f32 %v94_v29, %v93_v28  ;;  %vm92_vm6 = vcmp.eq.s32.totalorder %v61_v62, 1  ;;  %vm78_vm7 = vcmp.eq.s32.totalorder %v61_v62, 0  ;;  %p142_p0 = scmp.ne.s32.totalorder %s117_s17, %s141_s19  ;;  %p147_p2 = scmp.lt.s32.totalorder %s141_s19, %s141_s19 }
   0x9   :  { %p148_p3 = por %p147_p2, %p146_p1 }
   0xb   :  { %p149_p4 = pnand %p148_p3, %p142_p0 }
  0x82   :  { %v39_v14 = vpop.permute.xlu1 %38 }
  0x83   :  { %vm43_vm1 = vcmp.eq.s32.totalorder %v36_v15, %v39_v14 }
  0x84   :  { %v45_v18 = vsel %vm43_vm1, %v14_v0, 0.0 }
  0x85   :  { %v47_v20 = vsel %vm16_vm0, %v45_v18, 0.0 }
  0x86   :  { %v42_v16 = vpop.permute.xlu1 %41 }
  0x87   :  { %vm44_vm2 = vcmp.eq.s32.totalorder %v36_v15, %v42_v16 }
  0x88   :  { %v46_v22 = vsel %vm44_vm2, %v15_v1, 0.0 }
  0x89   :  { %v50_v24 = vsel %vm16_vm0, %v46_v22, 0.0 }
  0x90   :  { %v19_v7 = vpop.xlane.xlu0 %18 }
  0x91   :  { %v23_v8 = vsub.f32 %v14_v0, %v19_v7 }
  0x93   :  { %v25_v9 = vmul.f32 1.442695, %v23_v8 }
  0x94   :  { %v22_v10 = vpop.xlane.xlu0 %21 }
  0x95   :  { %133 = vpow2.f32 %v25_v9  ;;  %v24_v12 = vsub.f32 %v15_v1, %v22_v10 }
  0x97   :  { %v27_v13 = vmul.f32 1.442695, %v24_v12 }
  0x99   :  { %135 = vpow2.f32 %v27_v13 }
  0x9f   :  { %v134_v17 = vpop.eup %133 }
  0xa0   :  { %v29_v19 = vsel %vm16_vm0, %v134_v17, 0.0 }
  0xa1   :  { %30 = vadd.xlane.f32.xlu0 %v29_v19 }
  0xa3   :  { %v136_v21 = vpop.eup %135 }
  0xa4   :  { %v32_v23 = vsel %vm16_vm0, %v136_v21, 0.0 }
  0xa5   :  { %33 = vadd.xlane.f32.xlu1 %v32_v23  ;;  %48 = vadd.xlane.f32.xlu0 %v47_v20 }
  0xa9   :  { %51 = vadd.xlane.f32.xlu0 %v50_v24 }
 0x12e   :  { %v31_v31 = vpop.xlane.xlu0 %30 }
 0x12f   :  { %137 = vlog2.f32 %v31_v31 }
 0x132   :  { %v34_v32 = vpop.xlane.xlu1 %33  ;;  %v49_v35 = vpop.xlane.xlu0 %48 }
 0x133   :  { %139 = vlog2.f32 %v34_v32 }
 0x136   :  { %v52_v41 = vpop.xlane.xlu0 %51 }
 0x139   :  { %v138_v33 = vpop.eup %137 }
 0x13a   :  { %v54_v34 = vmul.f32 0.6931472, %v138_v33 }
 0x13c   :  { %v57_v36 = vadd.f32 %v54_v34, %v19_v7 }
 0x13d   :  { %v140_v37 = vpop.eup %139 }
 0x13e   :  { %v56_v38 = vmul.f32 0.6931472, %v140_v37  ;;  %v72_v39 = vsub.f32 %v57_v36, %v49_v35 }
 0x140   :  { %v58_v40 = vadd.f32 %v56_v38, %v22_v10  ;;  %v74_v42 = vsel %vm66_vm3, %v72_v39, 0.0 }
 0x141   :  { %v80_v45 = vsel %vm79_vm5, %v74_v42, 0.0 }
 0x142   :  { %v73_v43 = vsub.f32 %v58_v40, %v52_v41 }
 0x144   :  { %v75_v44 = vsel %vm67_vm4, %v73_v43, 0.0 }
 0x145   :  { %v81_v46 = vsel %vm79_vm5, %v75_v44, 0.0 }
 0x146   :  { %v82_v47 = vadd.f32 %v81_v46, %v80_v45 }
 0x148   :  { %83 = vadd.xlane.f32.xlu0 %v82_v47 }
 0x14c   :  { %96 = vadd.xlane.f32.xlu0 %v95_v30 }
 0x1d5   :  { %v84_v48 = vpop.xlane.xlu0 %83 }
 0x1d6   :  { %v85_v49 = vrot.slane %v84_v48, 4 }
 0x1d8   :  { %v86_v50 = vadd.f32 %v85_v49, %v84_v48 }
 0x1d9   :  { %v97_v51 = vpop.xlane.xlu0 %96 }
 0x1da   :  { %v87_v52 = vrot.slane %v86_v50, 2  ;;  %v98_v53 = vrot.slane %v97_v51, 4 }
 0x1dc   :  { %v99_v54 = vadd.f32 %v98_v53, %v97_v51  ;;  %v88_v55 = vadd.f32 %v87_v52, %v86_v50 }
 0x1de   :  { %v100_v56 = vrot.slane %v99_v54, 2  ;;  %v89_v57 = vrot.slane %v88_v55, 1 }
 0x1e0   :  { %v101_v58 = vadd.f32 %v100_v56, %v99_v54  ;;  %v90_v59 = vadd.f32 %v89_v57, %v88_v55 }
 0x1e2   :  { %124 = vpush %v90_v59  ;;  %v102_v60 = vrot.slane %v101_v58, 1 }
 0x1e4   :  { %v103_v61 = vadd.f32 %v102_v60, %v101_v58 }
 0x1e6   :  { %126 = vpush %v103_v61 }
 0x213   :  { %s125_s0 = spop %124 }
 0x214   :  { %v107_v0 = vstv %s125_s0 }
 0x217   :  { %s127_s18 = spop %126 }
 0x218   :  { %v105_v63 = vstv %s127_s18 }
 0x219   :  { %v106_v1 = vsel %vm92_vm6, %v105_v63, 0.0 }
 0x21a   :  { %v108_v2 = vsel %vm78_vm7, %v107_v0, %v106_v1 }
 0x21b   :  { %109 = vst [vmem:[#allocation2] sm:$0xff] %v108_v2 }
 0x21c   :  { %152 = shalt.err (!%p149_p4)
}
 0x21d   :  { %s153_s22 = scalar_lea.hbm %s225_s2, 128 }
 0x21e   :  { %p154_p5 = scmp.ne.s32.totalorder %s225_s2, %s153_s22  ;;  %p157_p6 = scmp.lt.u32.totalorder %s153_s22, %s225_s2 }
 0x220   :  { %p159_p7 = pnand %p157_p6, %p154_p5 }
 0x222   :  { %162 = shalt.err (!%p159_p7)
}
 0x223   :  { %119 = dma.vmem_to_hbm [thread:$0]  %s117_s17, 128, %s225_s2, [#allocation3]  }
 0x224   :  { %163 = dma.done.wait [#allocation3], 128  }
 0x225   :  { %164 = vsyncadd [#allocation3], 4294967168 }
 0x226   :  { %123 = vsyncpa [#allocation3], 1 }

</bundles_post_ra>
